<compile_context>
chip_gen: v7x
topology: tpu7x:2x2x1
jax: 0.10.0
libtpu: 0.0.40
codegen_flags: <defaults>
</compile_context>

<pallas_src>
import jax
import jax.numpy as jnp
from jax.experimental import pallas as pl
from jax.experimental.pallas import tpu as pltpu

C1 = 32
HW = 12
F_IN = C1 * HW * HW      # 4608
HID = 4
OUT = 2
BN_EPS = 1e-5


def _pick_tile_and_vmem():
    """Generation-aware batch tile & scoped-VMEM limit (safe fallback = v7x)."""
    try:
        vmem_bytes = pltpu.get_tpu_info().vmem_capacity_bytes
    except Exception:
        vmem_bytes = 64 * 1024 * 1024           # conservative (v7x per-TC)
    if vmem_bytes >= 96 * 1024 * 1024:          # v5e / v6e: 128 MiB physical
        return 1024, 80 * 1024 * 1024
    return 512, 48 * 1024 * 1024                # v7x: 64 MiB per TensorCore


def ymodel_head_kernel(x_ref, scale_ref, shift_ref, w1t_ref, b1_ref,
                       w2_ref, b2_ref, o_ref):
    # x_ref: (TB, 4608) bf16 batch tile -> upcast once (VPU, hidden under DMA).
    x = x_ref[...].astype(jnp.float32)

    # Folded BatchNorm1d (eval mode) + ReLU   -- VPU elementwise (fma + max)
    h = jnp.maximum(x * scale_ref[...] + shift_ref[...], 0.0)

    # Linear(4608 -> 4) + ReLU  -- W1 kept lane-dense as (4, 4608); contract axis 1 vs 1.
    h1 = jax.lax.dot_general(
        h, w1t_ref[...],
        dimension_numbers=(((1,), (1,)), ((), ())),
        preferred_element_type=jnp.float32) + b1_ref[...]
    h1 = jnp.maximum(h1, 0.0)

    # Linear(4 -> 2) + Tanh     -- tiny matmul + EUP tanh
    h2 = jnp.dot(h1, w2_ref[...], preferred_element_type=jnp.float32) + b2_ref[...]
    o_ref[...] = jnp.tanh(h2).astype(o_ref.dtype)


def ymodel_head(feat_nchw, params):
    """feat_nchw: (B, 32, 12, 12). Returns (B, 2) float32."""
    B = feat_nchw.shape[0]
    # torch.nn.Flatten on NCHW; cast to bf16 to halve HBM read traffic
    # (kernel upcasts to f32 before any arithmetic).
    x = feat_nchw.reshape(B, F_IN).astype(jnp.bfloat16)

    gamma, beta, mean, var, w1t, b1, w2, b2 = params

    # Fold BN (eval) into a single affine: y = x * scale + shift   (kept f32)
    scale = gamma * jax.lax.rsqrt(var + BN_EPS)          # (1, 4608)
    shift = beta - mean * scale                          # (1, 4608)

    tb_max, vmem_limit = _pick_tile_and_vmem()

    # Batch tile selection (no padding copy: last block may be ragged; OOB rows
    # only produce masked/discarded output rows since rows are independent).
    if B <= 16:
        TB = B                                       # full-batch block (always legal)
    elif B <= tb_max:
        TB = ((pl.cdiv(B, 2) + 15) // 16) * 16       # >=2 tiles -> both v7x TCs busy
    else:
        TB = tb_max
    grid = (pl.cdiv(B, TB),)

    def const(shape):
        # Params stay VMEM-resident across batch iterations (constant block index).
        return pl.BlockSpec(shape, lambda i, _s=shape: tuple(0 for _ in _s))

    out = pl.pallas_call(
        ymodel_head_kernel,
        out_shape=jax.ShapeDtypeStruct((B, OUT), jnp.float32),
        grid=grid,
        in_specs=[
            pl.BlockSpec((TB, F_IN), lambda i: (i, 0)),   # x  (tiled over batch, bf16)
            const((1, F_IN)),                             # scale
            const((1, F_IN)),                             # shift
            const((HID, F_IN)),                           # W1^T  (lane-dense)
            const((1, HID)),                              # b1
            const((HID, OUT)),                            # W2
            const((1, OUT)),                              # b2
        ],
        out_specs=pl.BlockSpec((TB, OUT), lambda i: (i, 0)),
        compiler_params=pltpu.CompilerParams(
            dimension_semantics=("parallel",),
            vmem_limit_bytes=vmem_limit,
        ),
    )(x, scale, shift, w1t, b1, w2, b2)
    return out


def init_params(key):
    """Deterministic synthetic parameters matching the torch module's shapes."""
    ks = jax.random.split(key, 8)
    gamma = jax.random.uniform(ks[0], (1, F_IN), jnp.float32, 0.5, 1.5)
    beta = jax.random.normal(ks[1], (1, F_IN), jnp.float32) * 0.1
    mean = jax.random.normal(ks[2], (1, F_IN), jnp.float32) * 0.1
    var = jax.random.uniform(ks[3], (1, F_IN), jnp.float32, 0.5, 1.5)
    # torch Linear stores (out, in); we keep W1 in that lane-dense (out, in) layout.
    w1t = jax.random.normal(ks[4], (HID, F_IN), jnp.float32) * (1.0 / jnp.sqrt(F_IN))
    b1 = jax.random.normal(ks[5], (1, HID), jnp.float32) * 0.01
    w2 = jax.random.normal(ks[6], (HID, OUT), jnp.float32) * (1.0 / jnp.sqrt(HID))
    b2 = jax.random.normal(ks[7], (1, OUT), jnp.float32) * 0.01
    return (gamma, beta, mean, var, w1t, b1, w2, b2)


def reference(feat_nchw, params, input_dtype=jnp.float32):
    gamma, beta, mean, var, w1t, b1, w2, b2 = params
    x = (feat_nchw.reshape(feat_nchw.shape[0], F_IN)
         .astype(input_dtype).astype(jnp.float32))
    h = (x - mean) / jnp.sqrt(var + BN_EPS) * gamma + beta
    h = jnp.maximum(h, 0.0)
    h1 = jnp.maximum(h @ w1t.T + b1, 0.0)
    return jnp.tanh(h1 @ w2 + b2)


if __name__ == "__main__":
    key = jax.random.PRNGKey(0)
    k_feat, k_params = jax.random.split(key)
    params = init_params(k_params)

    # Small case (single full-batch tile)
    B = 2
    feat = jax.random.normal(k_feat, (B, C1, HW, HW), jnp.float32)
    out = jax.block_until_ready(ymodel_head(feat, params))
    ref = reference(feat, params, input_dtype=jnp.bfloat16)
    assert out.shape == (B, OUT)
    assert jnp.allclose(out, ref, atol=1e-4, rtol=1e-4), "mismatch vs reference (B=2)"

    # Medium case exercising the two-tile + ragged-last-block (no-pad) path
    B2 = 20
    feat2 = jax.random.normal(k_feat, (B2, C1, HW, HW), jnp.float32)
    out2 = jax.block_until_ready(ymodel_head(feat2, params))
    ref2 = reference(feat2, params, input_dtype=jnp.bfloat16)
    assert out2.shape == (B2, OUT)
    assert jnp.allclose(out2, ref2, atol=1e-4, rtol=1e-4), "mismatch vs reference (B=20)"

    print("KERNEL_OK")
</pallas_src>

<mosaic_0001>
module attributes {stable_mosaic.version = 11 : i64} {
  func.func @ymodel_head_kernel(%arg0: i32, %arg1: memref<2x4608xbf16, #tpu.memory_space<vmem>>, %arg2: memref<1x4608xf32, #tpu.memory_space<vmem>>, %arg3: memref<1x4608xf32, #tpu.memory_space<vmem>>, %arg4: memref<4x4608xf32, #tpu.memory_space<vmem>>, %arg5: memref<1x4xf32, #tpu.memory_space<vmem>>, %arg6: memref<4x2xf32, #tpu.memory_space<vmem>>, %arg7: memref<1x2xf32, #tpu.memory_space<vmem>>, %arg8: memref<2x2xf32, #tpu.memory_space<vmem>>) attributes {dimension_semantics = [#tpu.dimension_semantics<parallel>], iteration_bounds = array<i64: 1>, scalar_prefetch = 0 : i64, scratch_operands = 0 : i64, tpu.core_type = #tpu.core_type<tc>, window_params = [{transform_indices = @transform_0, window_bounds = array<i64: 2, 4608>}, {pipeline_mode = #tpu.pipeline_mode<synchronous>, transform_indices = @transform_1, window_bounds = array<i64: 1, 4608>}, {pipeline_mode = #tpu.pipeline_mode<synchronous>, transform_indices = @transform_2, window_bounds = array<i64: 1, 4608>}, {pipeline_mode = #tpu.pipeline_mode<synchronous>, transform_indices = @transform_3, window_bounds = array<i64: 4, 4608>}, {pipeline_mode = #tpu.pipeline_mode<synchronous>, transform_indices = @transform_4, window_bounds = array<i64: 1, 4>}, {pipeline_mode = #tpu.pipeline_mode<synchronous>, transform_indices = @transform_5, window_bounds = array<i64: 4, 2>}, {pipeline_mode = #tpu.pipeline_mode<synchronous>, transform_indices = @transform_6, window_bounds = array<i64: 1, 2>}, {transform_indices = @transform_7, window_bounds = array<i64: 2, 2>}]} {
    %c0 = arith.constant 0 : index
    %c0_0 = arith.constant 0 : index
    %0 = vector.load %arg1[%c0, %c0_0] : memref<2x4608xbf16, #tpu.memory_space<vmem>>, vector<2x4608xbf16>
    %1 = arith.extf %0 : vector<2x4608xbf16> to vector<2x4608xf32>
    %c0_1 = arith.constant 0 : index
    %c0_2 = arith.constant 0 : index
    %2 = vector.load %arg2[%c0_1, %c0_2] : memref<1x4608xf32, #tpu.memory_space<vmem>>, vector<1x4608xf32>
    %3 = vector.broadcast %2 : vector<1x4608xf32> to vector<2x4608xf32>
    %4 = arith.mulf %1, %3 : vector<2x4608xf32>
    %c0_3 = arith.constant 0 : index
    %c0_4 = arith.constant 0 : index
    %5 = vector.load %arg3[%c0_3, %c0_4] : memref<1x4608xf32, #tpu.memory_space<vmem>>, vector<1x4608xf32>
    %6 = vector.broadcast %5 : vector<1x4608xf32> to vector<2x4608xf32>
    %7 = arith.addf %4, %6 : vector<2x4608xf32>
    %cst = arith.constant 0.000000e+00 : f32
    %8 = vector.broadcast %cst : f32 to vector<2x4608xf32>
    %9 = arith.maximumf %7, %8 : vector<2x4608xf32>
    %c0_5 = arith.constant 0 : index
    %c0_6 = arith.constant 0 : index
    %10 = vector.load %arg4[%c0_5, %c0_6] : memref<4x4608xf32, #tpu.memory_space<vmem>>, vector<4x4608xf32>
    %cst_7 = arith.constant dense<0.000000e+00> : vector<2x4xf32>
    %11 = tpu.matmul %9, %10, %cst_7 {dimension_numbers = #tpu.dot_dimension_numbers<[1], [1], [0], [0], [0, 0, 1, 0], [], []>} : vector<2x4608xf32>, vector<4x4608xf32>, vector<2x4xf32> -> vector<2x4xf32>
    %c0_8 = arith.constant 0 : index
    %c0_9 = arith.constant 0 : index
    %12 = vector.load %arg5[%c0_8, %c0_9] : memref<1x4xf32, #tpu.memory_space<vmem>>, vector<1x4xf32>
    %13 = vector.broadcast %12 : vector<1x4xf32> to vector<2x4xf32>
    %14 = arith.addf %11, %13 : vector<2x4xf32>
    %cst_10 = arith.constant 0.000000e+00 : f32
    %15 = vector.broadcast %cst_10 : f32 to vector<2x4xf32>
    %16 = arith.maximumf %14, %15 : vector<2x4xf32>
    %c0_11 = arith.constant 0 : index
    %c0_12 = arith.constant 0 : index
    %17 = vector.load %arg6[%c0_11, %c0_12] : memref<4x2xf32, #tpu.memory_space<vmem>>, vector<4x2xf32>
    %cst_13 = arith.constant dense<0.000000e+00> : vector<2x2xf32>
    %18 = tpu.matmul %16, %17, %cst_13 {dimension_numbers = #tpu.dot_dimension_numbers<[1], [0], [0], [1], [0, 0, 1, 1], [], []>} : vector<2x4xf32>, vector<4x2xf32>, vector<2x2xf32> -> vector<2x2xf32>
    %c0_14 = arith.constant 0 : index
    %c0_15 = arith.constant 0 : index
    %19 = vector.load %arg7[%c0_14, %c0_15] : memref<1x2xf32, #tpu.memory_space<vmem>>, vector<1x2xf32>
    %20 = vector.broadcast %19 : vector<1x2xf32> to vector<2x2xf32>
    %21 = arith.addf %18, %20 : vector<2x2xf32>
    %22 = math.tanh %21 : vector<2x2xf32>
    %c0_16 = arith.constant 0 : index
    %c0_17 = arith.constant 0 : index
    %23 = vector.load %arg8[%c0_16, %c0_17] : memref<2x2xf32, #tpu.memory_space<vmem>>, vector<2x2xf32>
    tpu.vector_store %arg8[%c0_16, %c0_17], %22 {strides = array<i32>} : memref<2x2xf32, #tpu.memory_space<vmem>>, vector<2x2xf32>,
    return
  }
  func.func @transform_0(%arg0: i32) -> (i32, i32) {
    %c0_i32 = arith.constant 0 : i32
    %c0_i32_0 = arith.constant 0 : i32
    return %arg0, %c0_i32 : i32, i32
  }
  func.func @transform_1(%arg0: i32) -> (i32, i32) {
    %c0_i32 = arith.constant 0 : i32
    %c0_i32_0 = arith.constant 0 : i32
    %c0_i32_1 = arith.constant 0 : i32
    return %c0_i32, %c0_i32_0 : i32, i32
  }
  func.func @transform_2(%arg0: i32) -> (i32, i32) {
    %c0_i32 = arith.constant 0 : i32
    %c0_i32_0 = arith.constant 0 : i32
    %c0_i32_1 = arith.constant 0 : i32
    return %c0_i32, %c0_i32_0 : i32, i32
  }
  func.func @transform_3(%arg0: i32) -> (i32, i32) {
    %c0_i32 = arith.constant 0 : i32
    %c0_i32_0 = arith.constant 0 : i32
    %c0_i32_1 = arith.constant 0 : i32
    return %c0_i32, %c0_i32_0 : i32, i32
  }
  func.func @transform_4(%arg0: i32) -> (i32, i32) {
    %c0_i32 = arith.constant 0 : i32
    %c0_i32_0 = arith.constant 0 : i32
    %c0_i32_1 = arith.constant 0 : i32
    return %c0_i32, %c0_i32_0 : i32, i32
  }
  func.func @transform_5(%arg0: i32) -> (i32, i32) {
    %c0_i32 = arith.constant 0 : i32
    %c0_i32_0 = arith.constant 0 : i32
    %c0_i32_1 = arith.constant 0 : i32
    return %c0_i32, %c0_i32_0 : i32, i32
  }
  func.func @transform_6(%arg0: i32) -> (i32, i32) {
    %c0_i32 = arith.constant 0 : i32
    %c0_i32_0 = arith.constant 0 : i32
    %c0_i32_1 = arith.constant 0 : i32
    return %c0_i32, %c0_i32_0 : i32, i32
  }
  func.func @transform_7(%arg0: i32) -> (i32, i32) {
    %c0_i32 = arith.constant 0 : i32
    %c0_i32_0 = arith.constant 0 : i32
    return %arg0, %c0_i32 : i32, i32
  }
}

</mosaic_0001>

<bundles_post_ra>
// kernel: tpu_custom_call.1
= control target key start
LH: loop header
LB: loop body
LE: loop exit
PB: predicated region body
PF: predicated region fallthrough
CT: control target
= control target key end

     0   :  { %12 = vsyncpa [#allocation3], 0  ;;  %s3025_s0 = inlined_call_operand.hbm [shape: bf16[2,4608], index: 0, kind: input, shape index: {}]   ;;  %s3026_s1 = inlined_call_operand.hbm [shape: f32[1,4608], index: 1, kind: input, shape index: {}]   ;;  %s3027_s2 = inlined_call_operand.hbm [shape: f32[1,4608], index: 2, kind: input, shape index: {}]   ;;  %s3028_s3 = inlined_call_operand.hbm [shape: f32[4,4608], index: 3, kind: input, shape index: {}]   ;;  %s3029_s4 = inlined_call_operand.vmem [shape: f32[1,4], index: 4, kind: input, shape index: {}]   ;;  %s3030_s5 = inlined_call_operand.vmem [shape: f32[4,2], index: 5, kind: input, shape index: {}]   ;;  %s3031_s6 = inlined_call_operand.vmem [shape: f32[1,2], index: 6, kind: input, shape index: {}]   ;;  %s3032_s7 = inlined_call_operand.hbm [shape: f32[2,2], index: 7, kind: output, shape index: {}]  }
   0x1   :  { %13 = vsyncpa [#allocation6], 0 }
   0x2   :  { %14 = vsyncpa [#allocation9], 0 }
   0x3   :  { %15 = vsyncpa [#allocation4], 0  ;;  %s2582_s24 = smov [#allocation5]   ;;  %s2583_s26 = smov [#allocation2]  }
   0x4   :  { %s32_s25 = sshll.u32 %s2582_s24, 4  ;;  %s22_s27 = sshll.u32 %s2583_s26, 4  ;;  %s33_s25 = int_to_ptr.vmem [resolvable:$true] %s32_s25  ;;  %s23_s27 = int_to_ptr.vmem [resolvable:$true] %s22_s27 }
   0x5   :  { %s2464_s30 = scalar_lea.hbm %s3026_s1, 576 }
   0x6   :  { %p2465_p0 = scmp.ne.s32.totalorder %s3026_s1, %s2464_s30  ;;  %p2468_p1 = scmp.lt.u32.totalorder %s2464_s30, %s3026_s1 }
   0x8   :  { %p2470_p2 = pnand %p2468_p1, %p2465_p0 }
   0xa   :  { %2473 = shalt.err (!%p2470_p2)
}
   0xb   :  { %s2474_s12 = scalar_lea.vmem %s33_s25, 576  ;;  %p2479_p4 = scmp.lt.s32.totalorder %s33_s25, %s33_s25 }
   0xc   :  { %p2475_p3 = scmp.ne.s32.totalorder %s33_s25, %s2474_s12  ;;  %p2480_p5 = scmp.lt.s32.totalorder %s2474_s12, %s2474_s12 }
   0xe   :  { %p2481_p6 = por %p2480_p5, %p2479_p4 }
  0x10   :  { %p2482_p7 = pnand %p2481_p6, %p2475_p3 }
  0x12   :  { %2485 = shalt.err (!%p2482_p7)
}
  0x13   :  { %35 = dma.hbm_to_vmem [thread:$0]  %s3026_s1, 576, %s33_s25, [#allocation6]  }
  0x14   :  { %s2486_s17 = scalar_lea.hbm %s3025_s0, 576 }
  0x15   :  { %p2487_p8 = scmp.ne.s32.totalorder %s3025_s0, %s2486_s17  ;;  %p2490_p9 = scmp.lt.u32.totalorder %s2486_s17, %s3025_s0 }
  0x17   :  { %p2492_p10 = pnand %p2490_p9, %p2487_p8 }
  0x19   :  { %2495 = shalt.err (!%p2492_p10)
}
  0x1a   :  { %s2496_s22 = scalar_lea.vmem %s23_s27, 576  ;;  %p2501_p12 = scmp.lt.s32.totalorder %s23_s27, %s23_s27 }
  0x1b   :  { %p2497_p11 = scmp.ne.s32.totalorder %s23_s27, %s2496_s22  ;;  %p2502_p13 = scmp.lt.s32.totalorder %s2496_s22, %s2496_s22 }
  0x1d   :  { %p2503_p0 = por %p2502_p13, %p2501_p12 }
  0x1f   :  { %p2504_p1 = pnand %p2503_p0, %p2497_p11 }
  0x21   :  { %2507 = shalt.err (!%p2504_p1)
}
  0x22   :  { %25 = dma.hbm_to_vmem [thread:$0]  %s3025_s0, 576, %s23_s27, [#allocation3]  }
  0x23   :  { %s2584_s24 = smov [#allocation7]   ;;  %s2585_s26 = smov [#allocation8]  }
  0x24   :  { %s42_s25 = sshll.u32 %s2584_s24, 4  ;;  %s52_s28 = sshll.u32 %s2585_s26, 4  ;;  %s43_s25 = int_to_ptr.vmem [resolvable:$true] %s42_s25  ;;  %s53_s28 = int_to_ptr.vmem [resolvable:$true] %s52_s28 }
  0x25   :  { %s2508_s8 = scalar_lea.hbm %s3027_s2, 576 }
  0x26   :  { %p2509_p2 = scmp.ne.s32.totalorder %s3027_s2, %s2508_s8  ;;  %p2512_p3 = scmp.lt.u32.totalorder %s2508_s8, %s3027_s2 }
  0x28   :  { %p2514_p4 = pnand %p2512_p3, %p2509_p2 }
  0x2a   :  { %2517 = shalt.err (!%p2514_p4)
}
  0x2b   :  { %s2518_s0 = scalar_lea.vmem %s43_s25, 576  ;;  %p2523_p6 = scmp.lt.s32.totalorder %s43_s25, %s43_s25 }
  0x2c   :  { %p2519_p5 = scmp.ne.s32.totalorder %s43_s25, %s2518_s0  ;;  %p2524_p7 = scmp.lt.s32.totalorder %s2518_s0, %s2518_s0 }
  0x2e   :  { %p2525_p8 = por %p2524_p7, %p2523_p6 }
  0x30   :  { %p2526_p9 = pnand %p2525_p8, %p2519_p5 }
  0x32   :  { %2529 = shalt.err (!%p2526_p9)
}
  0x33   :  { %45 = dma.hbm_to_vmem [thread:$0]  %s3027_s2, 576, %s43_s25, [#allocation6]  }
  0x34   :  { %s2530_s16 = scalar_lea.hbm %s3028_s3, 2304 }
  0x35   :  { %p2531_p10 = scmp.ne.s32.totalorder %s3028_s3, %s2530_s16  ;;  %p2534_p11 = scmp.lt.u32.totalorder %s2530_s16, %s3028_s3 }
  0x37   :  { %p2536_p12 = pnand %p2534_p11, %p2531_p10 }
  0x39   :  { %2539 = shalt.err (!%p2536_p12)
}
  0x3a   :  { %s2540_s21 = scalar_lea.vmem %s53_s28, 2304  ;;  %p2545_p0 = scmp.lt.s32.totalorder %s53_s28, %s53_s28 }
  0x3b   :  { %p2541_p13 = scmp.ne.s32.totalorder %s53_s28, %s2540_s21  ;;  %p2546_p1 = scmp.lt.s32.totalorder %s2540_s21, %s2540_s21 }
  0x3d   :  { %p2547_p2 = por %p2546_p1, %p2545_p0 }
  0x3f   :  { %p2548_p3 = pnand %p2547_p2, %p2541_p13 }
  0x41   :  { %2551 = shalt.err (!%p2548_p3)
}
  0x42   :  { %55 = dma.hbm_to_vmem [thread:$0]  %s3028_s3, 2304, %s53_s28, [#allocation9]  }
  0x43   :  { %2574 = dma.done.wait [#allocation3], 576  }
  0x44   :  { %2575 = vsyncadd [#allocation3], 4294966720 }
  0x45   :  { %2576 = dma.done.wait [#allocation6], 1152  }
  0x46   :  { %2577 = vsyncadd [#allocation6], 4294966144 }
  0x47   :  { %2578 = dma.done.wait [#allocation9], 2304  }
  0x48   :  { %2579 = vsyncadd [#allocation9], 4294964992  ;;  %v98_v0 = vlaneseq  ;;  %v2586_v1 = vmov 1983009808   ;;  %v755_v9 = vld [vmem:[#allocation8 + $0x40] sm:$0xff]  ;;  %v2686_v11 = vld [vmem:[#allocation2] sm:$0xff] }
  0x49   :  { %v245_v2 = vunpack.c.l.s4 %v2586_v1  ;;  %v747_v10 = vld [vmem:[#allocation8] sm:$0xff]  ;;  %v996_v15 = vcombine.high %v755_v9, %v755_v9  ;;  %v2694_v17 = vld [vmem:[#allocation5] sm:$0xff]  ;;  %v2712_v26 = vld [vmem:[#allocation5 + $0x10] sm:$0xff]  ;;  %v79_v27 = vunpack.c.l.bf16 %v2686_v11  ;;  %v80_v63 = vunpack.c.h.bf16 %v2686_v11 }
  0x4a   :  { %v99_v3 = vshrl.u32 %v98_v0, 7  ;;  %v988_v16 = vcombine.high %v747_v10, %v747_v10  ;;  %v2696_v18 = vld [vmem:[#allocation7] sm:$0xff]  ;;  %v2698_v19 = vld [vmem:[#allocation2 + $0x10] sm:$0xff]  ;;  %v2724_v35 = vld [vmem:[#allocation7 + $0x10] sm:$0xff]  ;;  %vm2297_vm0 = vcmask 1043456   ;;  %vm2588_vm1 = vmmov 0  }
  0x4b   :  { %v246_v4 = vunpack.c.0.s8 %v245_v2  ;;  %1584 = vmatprep.subr.mxu0 %v996_v15  ;;  %v83_v34 = vunpack.c.l.bf16 %v2698_v19  ;;  %v2736_v44 = vld [vmem:[#allocation8 + $0x48] sm:$0xff]  ;;  %v2748_v54 = vld [vmem:[#allocation8 + $0x10] sm:$0xff]  ;;  %vm2293_vm2 = vcmask 31744   ;;  %vm2372_vm3 = vcmask 9216  }
  0x4c   :  { %v2678_v5 = vsub.s32 0, %v99_v3  ;;  %v2680_v6 = vsub.s32 1, %v99_v3  ;;  %v2682_v7 = vsub.s32 2, %v99_v3  ;;  %v2684_v8 = vsub.s32 3, %v99_v3  ;;  %1024 = vmatprep.subr.mxu1 %v988_v16  ;;  %1585 = vmatpush1.xpose.msra.mxu0 %v755_v9  ;;  %v2743_v49 = vld [vmem:[#allocation8 + $0x8] sm:$0xff] }
  0x4d   :  { %v2688_v12 = vsub.s32 %v246_v4, %v99_v3  ;;  %v2690_v13 = vsub.s32 4, %v99_v3  ;;  %v2692_v14 = vsub.s32 5, %v99_v3  ;;  %v2700_v20 = vsub.s32 6, %v99_v3  ;;  %1025 = vmatpush1.xpose.msra.mxu1 %v747_v10 }
  0x4e   :  { %v2702_v21 = vsub.s32 7, %v99_v3  ;;  %v101_v22 = vrot.slane %v2694_v17, %v2678_v5  ;;  %v105_v23 = vrot.slane %v2694_v17, %v2680_v6  ;;  %v109_v24 = vrot.slane %v2694_v17, %v2682_v7 }
  0x4f   :  { %v113_v25 = vrot.slane %v2694_v17, %v2684_v8  ;;  %v426_v28 = vrot.slane %v2696_v18, %v2678_v5  ;;  %v430_v29 = vrot.slane %v2696_v18, %v2680_v6  ;;  %v434_v30 = vrot.slane %v2696_v18, %v2682_v7 }
  0x50   :  { %v242_v31 = vcombine.low %v101_v22, %v105_v23  ;;  %v438_v33 = vrot.slane %v2696_v18, %v2684_v8  ;;  %v165_v37 = vrot.slane %v2712_v26, %v2678_v5  ;;  %v169_v38 = vrot.slane %v2712_v26, %v2680_v6 }
  0x51   :  { %v243_v32 = vcombine.low %v109_v24, %v113_v25  ;;  %v567_v36 = vcombine.low %v426_v28, %v430_v29  ;;  %v173_v39 = vrot.slane %v2712_v26, %v2682_v7  ;;  %v177_v43 = vrot.slane %v2712_v26, %v2684_v8 }
  0x52   :  { %v250_v40 = vrot.slane %v242_v31, %v2688_v12  ;;  %v568_v42 = vcombine.low %v434_v30, %v438_v33  ;;  %v310_v46 = vcombine.low %v165_v37, %v169_v38  ;;  %v490_v47 = vrot.slane %v2724_v35, %v2678_v5 }
  0x53   :  { %v257_v41 = vrot.slane %v243_v32, %v2688_v12  ;;  %v575_v45 = vrot.slane %v567_v36, %v2688_v12  ;;  %v494_v48 = vrot.slane %v2724_v35, %v2680_v6  ;;  %v311_v52 = vcombine.low %v173_v39, %v177_v43 }
  0x54   :  { %v582_v51 = vrot.slane %v568_v42, %v2688_v12  ;;  %v498_v53 = vrot.slane %v2724_v35, %v2682_v7  ;;  %v318_v55 = vrot.slane %v310_v46, %v2688_v12  ;;  %v502_v56 = vrot.slane %v2724_v35, %v2684_v8 }
  0x55   :  { %v258_v50 = vcombine.low %v250_v40, %v257_v41  ;;  %v635_v57 = vcombine.low %v490_v47, %v494_v48  ;;  %v997_v58 = vcombine.high %v2736_v44, %v2736_v44  ;;  %v325_v61 = vrot.slane %v311_v52, %v2688_v12 }
  0x56   :  { %v583_v60 = vcombine.low %v575_v45, %v582_v51  ;;  %v989_v62 = vcombine.high %v2743_v49, %v2743_v49  ;;  %v636_v0 = vcombine.low %v498_v53, %v502_v56  ;;  %v990_v2 = vcombine.high %v2748_v54, %v2748_v54  ;;  %v2796_v56 = vld [vmem:[#allocation8 + $0x50] sm:$0xff] }
  0x57   :  { %v404_v59 = vmul.f32 %v258_v50, %v79_v27  ;;  %v643_v1 = vrot.slane %v635_v57, %v2688_v12  ;;  %1654 = vmatprep.subr.mxu0 %v997_v58  ;;  %v326_v4 = vcombine.low %v318_v55, %v325_v61  ;;  %v117_v9 = vrot.slane %v2694_v17, %v2690_v13 }
  0x58   :  { %1094 = vmatprep.subr.mxu1 %v989_v62  ;;  %v121_v10 = vrot.slane %v2694_v17, %v2692_v14  ;;  %v650_v15 = vrot.slane %v636_v0, %v2688_v12  ;;  %v125_v11 = vrot.slane %v2694_v17, %v2700_v20  ;;  %v129_v16 = vrot.slane %v2694_v17, %v2702_v21  ;;  %v2803_v62 = vld [vmem:[#allocation8 + $0x58] sm:$0xff] }
  0x59   :  { %v729_v3 = vadd.f32 %v583_v60, %v404_v59  ;;  %v442_v22 = vrot.slane %v2696_v18, %v2690_v13  ;;  %v408_v24 = vmul.f32 %v326_v4, %v83_v34  ;;  %v446_v27 = vrot.slane %v2696_v18, %v2692_v14  ;;  %v2805_v0 = vld [vmem:[#allocation8 + $0x18] sm:$0xff] }
  0x5a   :  { %v259_v25 = vcombine.low %v117_v9, %v121_v10  ;;  %v651_v28 = vcombine.low %v643_v1, %v650_v15  ;;  %v260_v29 = vcombine.low %v125_v11, %v129_v16  ;;  %v450_v30 = vrot.slane %v2696_v18, %v2700_v20  ;;  %v2817_v11 = vld [vmem:[#allocation5 + $0x8] sm:$0xff] }
  0x5b   :  { %v738_v23 = vmax.f32 %v729_v3, 0.0  ;;  %v454_v31 = vrot.slane %v2696_v18, %v2702_v21  ;;  %v584_v36 = vcombine.low %v442_v22, %v446_v27  ;;  %v181_v39 = vrot.slane %v2712_v26, %v2690_v13 }
  0x5c   :  { %v267_v33 = vrot.slane %v259_v25, %v2688_v12  ;;  %v733_v37 = vadd.f32 %v651_v28, %v408_v24  ;;  %v274_v34 = vrot.slane %v260_v29, %v2688_v12  ;;  %v185_v18 = vrot.slane %v2712_v26, %v2692_v14  ;;  %v2826_v28 = vld [vmem:[#allocation7 + $0x8] sm:$0xff] }
  0x5d   :  { %v781_v32 = vcombine.high %v738_v23, %v738_v23  ;;  %v788_v17 = vrot.slane %v738_v23, %v2688_v12  ;;  %v585_v38 = vcombine.low %v450_v30, %v454_v31  ;;  %v592_v42 = vrot.slane %v584_v36, %v2688_v12 }
  0x5e   :  { %v742_v43 = vmax.f32 %v733_v37, 0.0  ;;  %v275_v45 = vcombine.low %v267_v33, %v274_v34  ;;  %v189_v47 = vrot.slane %v2712_v26, %v2700_v20  ;;  %v193_v50 = vrot.slane %v2712_v26, %v2702_v21  ;;  %v2833_v33 = vld [vmem:[#allocation2 + $0x8] sm:$0xff] }
  0x5f   :  { %v796_v40 = vcombine.high %v788_v17, %v788_v17  ;;  %v795_v41 = vrot.slane %v781_v32, %v2688_v12  ;;  %v599_v46 = vrot.slane %v585_v38, %v2688_v12  ;;  %v327_v51 = vcombine.low %v181_v39, %v185_v18 }
  0x60   :  { %v506_v52 = vrot.slane %v2724_v35, %v2690_v13  ;;  %v849_v53 = vcombine.high %v742_v43, %v742_v43  ;;  %v856_v55 = vrot.slane %v742_v43, %v2688_v12  ;;  %v405_v57 = vmul.f32 %v275_v45, %v80_v63 }
  0x61   :  { %1088 = vmatprep.mubr.f32.mxu1 %v796_v40  ;;  %v797_v48 = vcombine.high %v795_v41, %v795_v41  ;;  %v600_v58 = vcombine.low %v592_v42, %v599_v46  ;;  %v84_v59 = vunpack.c.h.bf16 %v2698_v19  ;;  %v328_v60 = vcombine.low %v189_v47, %v193_v50  ;;  %v2846_v40 = vld [vmem:[#allocation5 + $0x18] sm:$0xff] }
  0x62   :  { %1089 = vmatmul.mubr.f32.vlgmr.msra.gmra.mrb[0].mxu1 %v788_v17  ;;  %v335_v26 = vrot.slane %v327_v51, %v2688_v12  ;;  %v510_v61 = vrot.slane %v2724_v35, %v2692_v14  ;;  %v864_v1 = vcombine.high %v856_v55, %v856_v55  ;;  %v863_v3 = vrot.slane %v849_v53, %v2688_v12 }
  0x63   :  { %1095 = vmatpush1.xpose.msra.mxu1 %v2743_v49  ;;  %1158 = vmatprep.mubr.f32.mxu1 %v797_v48  ;;  %v730_v63 = vadd.f32 %v600_v58, %v405_v57  ;;  %v514_v19 = vrot.slane %v2724_v35, %v2700_v20  ;;  %v2810_v49 = vld [vmem:[#allocation8 + $0x20] sm:$0xff]  ;;  %v998_v4 = vcombine.high %v2796_v56, %v2796_v56  ;;  %v81_v46 = vunpack.c.l.bf16 %v2833_v33 }
  0x64   :  { %1164 = vmatprep.subr.mxu1 %v990_v2  ;;  %v342_v9 = vrot.slane %v328_v60, %v2688_v12  ;;  %v518_v10 = vrot.slane %v2724_v35, %v2702_v21  ;;  %v652_v15 = vcombine.low %v506_v52, %v510_v61  ;;  %1648 = vmatprep.mubr.f32.mxu0 %v864_v1 }
  0x65   :  { %v865_v16 = vcombine.high %v863_v3, %v863_v3  ;;  %v739_v2 = vmax.f32 %v730_v63, 0.0  ;;  %v999_v22 = vcombine.high %v2803_v62, %v2803_v62  ;;  %v991_v23 = vcombine.high %v2805_v0, %v2805_v0  ;;  %1649 = vmatmul.mubr.f32.vlgmr.msra.gmra.mrb[0].mxu0 %v856_v55 }
  0x66   :  { %v343_v24 = vcombine.low %v335_v26, %v342_v9  ;;  %v653_v25 = vcombine.low %v514_v19, %v518_v10  ;;  %v660_v27 = vrot.slane %v652_v15, %v2688_v12  ;;  %v992_v35 = vcombine.high %v2810_v49, %v2810_v49  ;;  %1655 = vmatpush1.xpose.msra.mxu0 %v2736_v44 }
  0x67   :  { %1718 = vmatprep.mubr.f32.mxu0 %v865_v16  ;;  %v805_v29 = vrot.slane %v739_v2, %v2688_v12  ;;  %v798_v30 = vcombine.high %v739_v2, %v739_v2  ;;  %v133_v31 = vrot.slane %v2817_v11, %v2678_v5  ;;  %1724 = vmatprep.subr.mxu0 %v998_v4  ;;  %v2875_v4 = vld [vmem:[#allocation2 + $0x18] sm:$0xff]  ;;  %v2880_v16 = vld [vmem:[#allocation8 + $0x60] sm:$0xff] }
  0x68   :  { %v409_v32 = vmul.f32 %v343_v24, %v84_v59  ;;  %v667_v17 = vrot.slane %v653_v25, %v2688_v12  ;;  %v137_v36 = vrot.slane %v2817_v11, %v2680_v6  ;;  %v141_v37 = vrot.slane %v2817_v11, %v2682_v7 }
  0x69   :  { %v813_v44 = vcombine.high %v805_v29, %v805_v29  ;;  %v2840_v34 = vrot.slane %v798_v30, %v2688_v12  ;;  %v145_v38 = vrot.slane %v2817_v11, %v2684_v8  ;;  %v458_v39 = vrot.slane %v2826_v28, %v2678_v5  ;;  %v2887_v30 = vld [vmem:[#allocation8 + $0x68] sm:$0xff] }
  0x6a   :  { %1159 = vmatmul.mubr.f32.vlgmr.msra.gmra.mrb[0].mxu1 %v795_v41  ;;  %v668_v42 = vcombine.low %v660_v27, %v667_v17  ;;  %v276_v18 = vcombine.low %v133_v31, %v137_v36  ;;  %v462_v43 = vrot.slane %v2826_v28, %v2680_v6  ;;  %v466_v41 = vrot.slane %v2826_v28, %v2682_v7  ;;  %v2889_v31 = vld [vmem:[#allocation8 + $0x28] sm:$0xff]  ;;  %v2895_v36 = vld [vmem:[#allocation8 + $0x30] sm:$0xff] }
  0x6b   :  { %1165 = vmatpush1.xpose.msra.mxu1 %v2748_v54  ;;  %1228 = vmatprep.mubr.f32.mxu1 %v813_v44  ;;  %v814_v45 = vcombine.high %v2840_v34, %v2840_v34  ;;  %v277_v47 = vcombine.low %v141_v37, %v145_v38  ;;  %v470_v48 = vrot.slane %v2826_v28, %v2684_v8  ;;  %v2858_v54 = vld [vmem:[#allocation7 + $0x18] sm:$0xff]  ;;  %v85_v17 = vunpack.c.l.bf16 %v2875_v4 }
  0x6c   :  { %1234 = vmatprep.subr.mxu1 %v991_v23  ;;  %v734_v50 = vadd.f32 %v668_v42, %v409_v32  ;;  %v284_v51 = vrot.slane %v276_v18, %v2688_v12  ;;  %v601_v52 = vcombine.low %v458_v39, %v462_v43  ;;  %v197_v53 = vrot.slane %v2846_v40, %v2678_v5 }
  0x6d   :  { %v291_v55 = vrot.slane %v277_v47, %v2688_v12  ;;  %v602_v57 = vcombine.low %v466_v41, %v470_v48  ;;  %v201_v58 = vrot.slane %v2846_v40, %v2680_v6  ;;  %v205_v59 = vrot.slane %v2846_v40, %v2682_v7  ;;  %1719 = vmatmul.mubr.f32.vlgmr.msra.gmra.mrb[0].mxu0 %v863_v3 }
  0x6e   :  { %v743_v60 = vmax.f32 %v734_v50, 0.0  ;;  %v609_v26 = vrot.slane %v601_v52, %v2688_v12  ;;  %v209_v61 = vrot.slane %v2846_v40, %v2684_v8  ;;  %v522_v1 = vrot.slane %v2858_v54, %v2678_v5  ;;  %1725 = vmatpush1.xpose.msra.mxu0 %v2796_v56 }
  0x6f   :  { %v292_v63 = vcombine.low %v284_v51, %v291_v55  ;;  %v616_v19 = vrot.slane %v602_v57, %v2688_v12  ;;  %v344_v9 = vcombine.low %v197_v53, %v201_v58  ;;  %v526_v3 = vrot.slane %v2858_v54, %v2680_v6  ;;  %1794 = vmatprep.subr.mxu0 %v999_v22 }
  0x70   :  { %v873_v10 = vrot.slane %v743_v60, %v2688_v12  ;;  %v866_v15 = vcombine.high %v743_v60, %v743_v60  ;;  %v345_v2 = vcombine.low %v205_v59, %v209_v61  ;;  %v530_v23 = vrot.slane %v2858_v54, %v2682_v7 }
  0x71   :  { %v406_v56 = vmul.f32 %v292_v63, %v81_v46  ;;  %v617_v24 = vcombine.low %v609_v26, %v616_v19  ;;  %v352_v25 = vrot.slane %v344_v9, %v2688_v12  ;;  %v534_v27 = vrot.slane %v2858_v54, %v2684_v8 }
  0x72   :  { %1229 = vmatmul.mubr.f32.vlgmr.msra.gmra.mrb[0].mxu1 %v805_v29  ;;  %v881_v22 = vcombine.high %v873_v10, %v873_v10  ;;  %v880_v32 = vrot.slane %v866_v15, %v2688_v12  ;;  %v359_v29 = vrot.slane %v345_v2, %v2688_v12  ;;  %v1000_v37 = vcombine.high %v2880_v16, %v2880_v16 }
  0x73   :  { %1235 = vmatpush1.xpose.msra.mxu1 %v2805_v0  ;;  %1298 = vmatprep.mubr.f32.mxu1 %v814_v45  ;;  %v731_v44 = vadd.f32 %v617_v24, %v406_v56  ;;  %v669_v38 = vcombine.low %v522_v1, %v526_v3  ;;  %v670_v39 = vcombine.low %v530_v23, %v534_v27  ;;  %v82_v57 = vunpack.c.h.bf16 %v2833_v33 }
  0x74   :  { %1304 = vmatprep.subr.mxu1 %v992_v35  ;;  %1788 = vmatprep.mubr.f32.mxu0 %v881_v22  ;;  %v882_v0 = vcombine.high %v880_v32, %v880_v32  ;;  %v360_v42 = vcombine.low %v352_v25, %v359_v29  ;;  %v1001_v18 = vcombine.high %v2887_v30, %v2887_v30 }
  0x75   :  { %v993_v43 = vcombine.high %v2889_v31, %v2889_v31  ;;  %v740_v41 = vmax.f32 %v731_v44, 0.0  ;;  %v677_v45 = vrot.slane %v669_v38, %v2688_v12  ;;  %v684_v46 = vrot.slane %v670_v39, %v2688_v12  ;;  %1789 = vmatmul.mubr.f32.vlgmr.msra.gmra.mrb[0].mxu0 %v873_v10  ;;  %v2957_v39 = vld [vmem:[#allocation8 + $0x70] sm:$0xff] }
  0x76   :  { %v994_v35 = vcombine.high %v2895_v36, %v2895_v36  ;;  %v410_v47 = vmul.f32 %v360_v42, %v85_v17  ;;  %v149_v48 = vrot.slane %v2817_v11, %v2690_v13  ;;  %v153_v50 = vrot.slane %v2817_v11, %v2692_v14  ;;  %1795 = vmatpush1.xpose.msra.mxu0 %v2803_v62 }
  0x77   :  { %v157_v51 = vrot.slane %v2817_v11, %v2700_v20  ;;  %1858 = vmatprep.mubr.f32.mxu0 %v882_v0  ;;  %v822_v52 = vrot.slane %v740_v41, %v2688_v12  ;;  %v685_v53 = vcombine.low %v677_v45, %v684_v46  ;;  %v815_v55 = vcombine.high %v740_v41, %v740_v41  ;;  %v92_v46 = vld [vmem:[#allocation5 + $0x20] sm:$0xf] }
  0x78   :  { %1864 = vmatprep.subr.mxu0 %v1000_v37  ;;  %v161_v58 = vrot.slane %v2817_v11, %v2702_v21  ;;  %v293_v59 = vcombine.low %v149_v48, %v153_v50  ;;  %v474_v60 = vrot.slane %v2826_v28, %v2690_v13  ;;  %v478_v26 = vrot.slane %v2826_v28, %v2692_v14  ;;  %v417_v48 = vld [vmem:[#allocation7 + $0x20] sm:$0xf] }
  0x79   :  { %v830_v62 = vcombine.high %v822_v52, %v822_v52  ;;  %v735_v61 = vadd.f32 %v685_v53, %v410_v47  ;;  %v2927_v1 = vrot.slane %v815_v55, %v2688_v12  ;;  %v482_v33 = vrot.slane %v2826_v28, %v2700_v20 }
  0x7a   :  { %1299 = vmatmul.mubr.f32.vlgmr.msra.gmra.mrb[0].mxu1 %v2840_v34  ;;  %v294_v11 = vcombine.low %v157_v51, %v161_v58  ;;  %v301_v63 = vrot.slane %v293_v59, %v2688_v12  ;;  %v486_v19 = vrot.slane %v2826_v28, %v2702_v21  ;;  %v618_v9 = vcombine.low %v474_v60, %v478_v26 }
  0x7b   :  { %1305 = vmatpush1.xpose.msra.mxu1 %v2810_v49  ;;  %1368 = vmatprep.mubr.f32.mxu1 %v830_v62  ;;  %v744_v3 = vmax.f32 %v735_v61, 0.0  ;;  %v831_v34 = vcombine.high %v2927_v1, %v2927_v1  ;;  %v213_v10 = vrot.slane %v2846_v40, %v2690_v13  ;;  %v217_v15 = vrot.slane %v2846_v40, %v2692_v14  ;;  %v78_v62 = vld [vmem:[#allocation2 + $0x20] sm:$0xf] }
  0x7c   :  { %1374 = vmatprep.subr.mxu1 %v993_v43  ;;  %v308_v49 = vrot.slane %v294_v11, %v2688_v12  ;;  %v619_v2 = vcombine.low %v482_v33, %v486_v19  ;;  %v626_v23 = vrot.slane %v618_v9, %v2688_v12  ;;  %v221_v28 = vrot.slane %v2846_v40, %v2700_v20  ;;  %v2964_v43 = vld [vmem:[#allocation8 + $0x38] sm:$0xff] }
  0x7d   :  { %v890_v56 = vrot.slane %v744_v3, %v2688_v12  ;;  %v883_v24 = vcombine.high %v744_v3, %v744_v3  ;;  %v225_v25 = vrot.slane %v2846_v40, %v2702_v21  ;;  %v361_v27 = vcombine.low %v213_v10, %v217_v15  ;;  %1859 = vmatmul.mubr.f32.vlgmr.msra.gmra.mrb[0].mxu0 %v880_v32  ;;  %v762_v3 = vld [vmem:[#allocation8 + $0x78] sm:$0xff] }
  0x7e   :  { %v309_v22 = vcombine.low %v301_v63, %v308_v49  ;;  %v633_v17 = vrot.slane %v619_v2, %v2688_v12  ;;  %v538_v29 = vrot.slane %v2858_v54, %v2690_v13  ;;  %v542_v37 = vrot.slane %v2858_v54, %v2692_v14  ;;  %1865 = vmatpush1.xpose.msra.mxu0 %v2880_v16 }
  0x7f   :  { %v898_v44 = vcombine.high %v890_v56, %v890_v56  ;;  %v2955_v38 = vrot.slane %v883_v24, %v2688_v12  ;;  %v362_v40 = vcombine.low %v221_v28, %v225_v25  ;;  %v369_v32 = vrot.slane %v361_v27, %v2688_v12  ;;  %1934 = vmatprep.subr.mxu0 %v1001_v18 }
  0x80   :  { %v407_v0 = vmul.f32 %v309_v22, %v82_v57  ;;  %v634_v42 = vcombine.low %v626_v23, %v633_v17  ;;  %v546_v13 = vrot.slane %v2858_v54, %v2700_v20  ;;  %v550_v14 = vrot.slane %v2858_v54, %v2702_v21  ;;  %v763_v17 = vld [vmem:[#allocation8 + $0x80] sm:$0xff] }
  0x81   :  { %1928 = vmatprep.mubr.f32.mxu0 %v898_v44  ;;  %v86_v16 = vunpack.c.h.bf16 %v2875_v4  ;;  %v376_v41 = vrot.slane %v362_v40, %v2688_v12  ;;  %v686_v45 = vcombine.low %v538_v29, %v542_v37  ;;  %v1002_v18 = vcombine.high %v2957_v39, %v2957_v39 }
  0x82   :  { %1369 = vmatmul.mubr.f32.vlgmr.msra.gmra.mrb[0].mxu1 %v822_v52  ;;  %v732_v20 = vadd.f32 %v634_v42, %v407_v0  ;;  %v687_v47 = vcombine.low %v546_v13, %v550_v14  ;;  %v899_v21 = vcombine.high %v2955_v38, %v2955_v38  ;;  %v229_v52 = vrot.slane %v92_v46, %v2678_v5 }
  0x83   :  { %1375 = vmatpush1.xpose.msra.mxu1 %v2889_v31  ;;  %1438 = vmatprep.mubr.f32.mxu1 %v831_v34  ;;  %v377_v54 = vcombine.low %v369_v32, %v376_v41  ;;  %v694_v4 = vrot.slane %v686_v45, %v2688_v12  ;;  %v995_v31 = vcombine.high %v2964_v43, %v2964_v43  ;;  %v87_v34 = vunpack.c.l.bf16 %v78_v62 }
  0x84   :  { %1444 = vmatprep.subr.mxu1 %v994_v35  ;;  %v741_v50 = vmax.f32 %v732_v20, 0.0  ;;  %v701_v51 = vrot.slane %v687_v47, %v2688_v12  ;;  %v233_v53 = vrot.slane %v92_v46, %v2680_v6  ;;  %v237_v57 = vrot.slane %v92_v46, %v2682_v7 }
  0x85   :  { %v411_v55 = vmul.f32 %v377_v54, %v86_v16  ;;  %v241_v58 = vrot.slane %v92_v46, %v2684_v8  ;;  %v554_v35 = vrot.slane %v417_v48, %v2678_v5  ;;  %1929 = vmatmul.mubr.f32.vlgmr.msra.gmra.mrb[0].mxu0 %v890_v56  ;;  %v558_v11 = vrot.slane %v417_v48, %v2680_v6  ;;  %v2285_v16 = vld [vmem:[%s3030_s5] sm:$0xf]  ;;  %s2589_s5 = smov [#allocation10]  }
  0x86   :  { %v839_v59 = vrot.slane %v741_v50, %v2688_v12  ;;  %v702_v60 = vcombine.low %v694_v4, %v701_v51  ;;  %v832_v26 = vcombine.high %v741_v50, %v741_v50  ;;  %v378_v61 = vcombine.low %v229_v52, %v233_v53  ;;  %1935 = vmatpush1.xpose.msra.mxu0 %v2887_v30  ;;  %s2380_s28 = sshll.u32 %s2589_s5, 4  ;;  %s2381_s28 = int_to_ptr.vmem [resolvable:$true] %s2380_s28 }
  0x87   :  { %1998 = vmatprep.mubr.f32.mxu0 %v899_v21  ;;  %v379_v33 = vcombine.low %v237_v57, %v241_v58  ;;  %v562_v63 = vrot.slane %v417_v48, %v2682_v7  ;;  %2004 = vmatprep.subr.mxu0 %v1002_v18  ;;  %v566_v15 = vrot.slane %v417_v48, %v2684_v8  ;;  %v2392_v21 = vld [vmem:[%s3031_s6] ss:$0 sm:$0xff]  ;;  %p2557_p5 = scmp.lt.s32.totalorder %s2381_s28, %s2381_s28 }
  0x88   :  { %v847_v19 = vcombine.high %v839_v59, %v839_v59  ;;  %v736_v9 = vadd.f32 %v702_v60, %v411_v55  ;;  %v386_v5 = vrot.slane %v378_v61, %v2688_v12  ;;  %v703_v30 = vcombine.low %v554_v35, %v558_v11 }
  0x89   :  { %v393_v10 = vrot.slane %v379_v33, %v2688_v12  ;;  %v846_v7 = vrot.slane %v832_v26, %v2688_v12  ;;  %v704_v2 = vcombine.low %v562_v63, %v566_v15  ;;  %v1003_v28 = vcombine.high %v762_v3, %v762_v3 }
  0x8a   :  { %1439 = vmatmul.mubr.f32.vlgmr.msra.gmra.mrb[0].mxu1 %v2927_v1  ;;  %v745_v6 = vmax.f32 %v736_v9, 0.0  ;;  %v711_v23 = vrot.slane %v703_v30, %v2688_v12  ;;  %v1004_v40 = vcombine.high %v763_v17, %v763_v17 }
  0x8b   :  { %1445 = vmatpush1.xpose.msra.mxu1 %v2895_v36  ;;  %1508 = vmatprep.mubr.f32.mxu1 %v847_v19  ;;  %v394_v49 = vcombine.low %v386_v5, %v393_v10  ;;  %v718_v25 = vrot.slane %v704_v2, %v2688_v12  ;;  %v848_v36 = vcombine.high %v846_v7, %v846_v7 }
  0x8c   :  { %1514 = vmatprep.subr.mxu1 %v995_v31  ;;  %v907_v1 = vrot.slane %v745_v6, %v2688_v12  ;;  %v900_v56 = vcombine.high %v745_v6, %v745_v6 }
  0x8d   :  { %v412_v24 = vmul.f32 %v394_v49, %v87_v34  ;;  %1999 = vmatmul.mubr.f32.vlgmr.msra.gmra.mrb[0].mxu0 %v2955_v38  ;;  %v719_v22 = vcombine.low %v711_v23, %v718_v25 }
  0x8e   :  { %v915_v8 = vcombine.high %v907_v1, %v907_v1  ;;  %2005 = vmatpush1.xpose.msra.mxu0 %v2957_v39  ;;  %v914_v27 = vrot.slane %v900_v56, %v2688_v12  ;;  %v764_v39 = vld [vmem:[#allocation8 + $0x88] sm:$0xff] }
  0x8f   :  { %2074 = vmatprep.subr.mxu0 %v1003_v28  ;;  %v737_v29 = vadd.f32 %v719_v22, %v412_v24  ;;  %v1005_v42 = vcombine.high %v764_v39, %v764_v39 }
  0x90   :  { %2068 = vmatprep.mubr.f32.mxu0 %v915_v8  ;;  %v916_v37 = vcombine.high %v914_v27, %v914_v27 }
  0x91   :  { %v746_v44 = vmax.f32 %v737_v29, 0.0 }
  0x92   :  { %1509 = vmatmul.mubr.f32.vlgmr.msra.gmra.mrb[0].mxu1 %v839_v59 }
  0x93   :  { %1515 = vmatpush1.xpose.msra.mxu1 %v2964_v43  ;;  %1578 = vmatprep.mubr.f32.mxu1 %v848_v36  ;;  %v924_v38 = vrot.slane %v746_v44, %v2688_v12  ;;  %v917_v0 = vcombine.high %v746_v44, %v746_v44  ;;  %v2587_v43 = vmov 0.0  }
  0x94   :  { %2397 = vmatprep.subr.mxu1 %v2587_v43 }
  0x95   :  { %2069 = vmatmul.mubr.f32.vlgmr.msra.gmra.mrb[0].mxu0 %v907_v1  ;;  %v932_v32 = vcombine.high %v924_v38, %v924_v38  ;;  %v931_v13 = vrot.slane %v917_v0, %v2688_v12  ;;  %v2391_v12 = vld [vmem:[%s3029_s4] ss:$0 sm:$0xff]  ;;  %s2552_s4 = scalar_lea.vmem %s2381_s28, 32 }
  0x96   :  { %2075 = vmatpush1.xpose.msra.mxu0 %v762_v3  ;;  %2138 = vmatprep.mubr.f32.mxu0 %v916_v37  ;;  %p2553_p4 = scmp.ne.s32.totalorder %s2381_s28, %s2552_s4  ;;  %p2558_p6 = scmp.lt.s32.totalorder %s2552_s4, %s2552_s4 }
  0x97   :  { %2144 = vmatprep.subr.mxu0 %v1004_v40  ;;  %v933_v14 = vcombine.high %v931_v13, %v931_v13 }
  0x98   :  { %p2559_p7 = por %p2558_p6, %p2557_p5 }
  0x9a   :  { %1579 = vmatmul.mubr.f32.vlgmr.msra.gmra.mrb[0].mxu1 %v846_v7  ;;  %p2560_p8 = pnand %p2559_p7, %p2553_p4 }
  0x9b   :  { %2398 = vmatpush3.msk.msra.mxu1 %vm2297_vm0, %v2285_v16  ;;  %2399 = vmatprep.mubr.msk.f32.mxu1 %vm2588_vm1, %v2587_v43 }
  0x9d   :  { %2139 = vmatmul.mubr.f32.vlgmr.msra.gmra.mrb[0].mxu0 %v914_v27 }
  0x9e   :  { %2145 = vmatpush1.xpose.msra.mxu0 %v763_v17  ;;  %2208 = vmatprep.mubr.f32.mxu0 %v932_v32 }
  0x9f   :  { %2214 = vmatprep.subr.mxu0 %v1005_v42 }
  0xa5   :  { %2209 = vmatmul.mubr.f32.vlgmr.msra.gmra.mrb[0].mxu0 %v924_v38 }
  0xa6   :  { %2215 = vmatpush1.xpose.msra.mxu0 %v764_v39  ;;  %2278 = vmatprep.mubr.f32.mxu0 %v933_v14 }
  0xad   :  { %2279 = vmatmul.mubr.f32.vlgmr.msra.gmra.mrb[0].mxu0 %v931_v13 }
 0x16d   :  { %v1580_v41 = vpop.f32.mrb[0].mxu1 }
 0x16e   :  { %v1582_v45 = vpop.f32.mrb[1].mxu1  ;;  %v2402_v46 = vadd.f32 %v2391_v12, %v1580_v41 }
 0x180   :  { %v2280_v18 = vpop.f32.mrb[0].mxu0 }
 0x181   :  { %v2403_v20 = vadd.f32 %v2402_v46, %v2280_v18  ;;  %v2282_v47 = vpop.f32.mrb[1].mxu0 }
 0x183   :  { %v2284_v48 = vmax.f32 %v2403_v20, 0.0 }
 0x185   :  { %2400 = vmatmul.mubr.msk.f32.vlgmr.msra.gmra.mrb[2].mxu1 %vm2293_vm2, %v2284_v48 }
 0x258   :  { %v2367_v54 = vpop.f32.mrb[2].mxu1 }
 0x259   :  { %v2368_v4 = vadd.f32 %v2392_v21, %v2367_v54  ;;  %v2401_v31 = vpop.f32.mrb[3].mxu1 }
 0x25b   :  { %2462 = vtanh.f32 %v2368_v4 }
 0x265   :  { %v2463_v50 = vpop.eup %2462 }
 0x266   :  { %2373 = vst.msk [vmem:[#allocation10] sm:$0x3] %vm2372_vm3, %v2463_v50 }
 0x267   :  { %2563 = shalt.err (!%p2560_p8)
}
 0x268   :  { %s2564_s6 = scalar_lea.hbm %s3032_s7, 32 }
 0x269   :  { %p2565_p9 = scmp.ne.s32.totalorder %s3032_s7, %s2564_s6  ;;  %p2568_p10 = scmp.lt.u32.totalorder %s2564_s6, %s3032_s7 }
 0x26b   :  { %p2570_p11 = pnand %p2568_p10, %p2565_p9 }
 0x26d   :  { %2573 = shalt.err (!%p2570_p11)
}
 0x26e   :  { %2383 = dma.vmem_to_hbm [thread:$0]  %s2381_s28, 32, %s3032_s7, [#allocation4]  }
 0x26f   :  { %2580 = dma.done.wait [#allocation4], 32  }
 0x270   :  { %2581 = vsyncadd [#allocation4], 4294967264 }
 0x271   :  { %2387 = vsyncpa [#allocation3], 1 }
 0x272   :  { %2388 = vsyncpa [#allocation6], 1 }
 0x273   :  { %2389 = vsyncpa [#allocation9], 1 }
 0x274   :  { %2390 = vsyncpa [#allocation4], 1 }

</bundles_post_ra>
